<compile_context>
chip_gen: v7x
topology: tpu7x:2x2x1
jax: 0.10.0
libtpu: 0.0.40
codegen_flags: <defaults>
</compile_context>

<pallas_src>
import functools

import jax
import jax.numpy as jnp
from jax.experimental import pallas as pl
from jax.experimental.pallas import tpu as pltpu


def _dice_partial_kernel(pred_ref, gt_ref, inter_out_ref, union_out_ref,
                         inter_acc, union_acc, *,
                         force_binary: bool, threshold: float,
                         tiles_per_chunk: int, num_tiles: int,
                         ns_valid: int, sub_s: int, has_tail: bool):
    """One (batch, chunk, spatial-tile) step of the dice partial sums."""
    p = pl.program_id(1)
    t = pl.program_id(2)
    tile = p * tiles_per_chunk + t          # global spatial-tile index

    @pl.when(t == 0)
    def _():
        inter_acc[...] = jnp.zeros_like(inter_acc)
        union_acc[...] = jnp.zeros_like(union_acc)

    def load_inputs():
        pred = pred_ref[...]                # (1, C, S, 128) native dtype
        gt = gt_ref[...]
        if force_binary:
            # Compare in the native dtype (cheaper for bf16), then cast.
            gt = gt > jnp.asarray(threshold, dtype=gt.dtype)
        return pred.astype(jnp.float32), gt.astype(jnp.float32)

    def fold(x):
        # (1, C, S, 128) -> (C, 8, 128): sum groups of 8 sublanes.
        # Splitting the sublane dim keeps the vreg layout; pure VALU adds.
        if sub_s == 8:
            return x[0]
        return x.reshape(x.shape[1], sub_s // 8, 8, 128).sum(axis=1)

    def accumulate(pred, gt):
        inter_acc[...] += fold(pred * gt)
        union_acc[...] += fold(pred * pred + gt)

    if has_tail:
        is_tail = tile == (num_tiles - 1)

        @pl.when(jnp.logical_not(is_tail))
        def _():
            pred, gt = load_inputs()
            accumulate(pred, gt)

        @pl.when(is_tail)
        def _():
            # Final (partial) tile: rows past the real data are unspecified
            # memory (Pallas edge block) — mask BOTH operands to zero.
            pred, gt = load_inputs()
            row = jax.lax.broadcasted_iota(jnp.int32, pred.shape, 2)
            valid = (tile * sub_s + row) < ns_valid
            pred = jnp.where(valid, pred, 0.0)
            gt = jnp.where(valid, gt, 0.0)
            accumulate(pred, gt)
    else:
        pred, gt = load_inputs()
        accumulate(pred, gt)

    @pl.when(t == tiles_per_chunk - 1)
    def _():
        inter_out_ref[0, 0] = inter_acc[...]
        union_out_ref[0, 0] = union_acc[...]


def _vmem_capacity_bytes() -> int:
    try:
        info = pltpu.get_tpu_info()
        v = getattr(info, "vmem_capacity_bytes", None)
        if v:
            return int(v)
    except Exception:
        pass
    return 64 * 1024 * 1024     # conservative (v7x per-TensorCore VMEM)


def _pick_tile_sublanes(C: int, ns_data: int, in_itemsize: int,
                        vmem_bytes: int) -> int:
    """Sublanes (rows of 128 lanes) per channel per grid step."""
    # ~2 MiB per input block (native dtype): measured HBM-roofline sweet spot.
    target_block_bytes = 2 * 1024 * 1024
    s = target_block_bytes // (C * 128 * in_itemsize)
    # Conservative VMEM cost per sublane: 2 inputs x 2 pipeline buffers
    # (native dtype) + ~6 block-sized f32 temporaries in the kernel body.
    per_sublane = C * 128 * (2 * 2 * in_itemsize + 6 * 4)
    s = min(s, int(0.8 * vmem_bytes) // max(per_sublane, 1))
    s = min(s, ((ns_data + 7) // 8) * 8)      # never exceed the data
    s = max(8, (s // 8) * 8)                  # multiple of 8 sublanes
    return int(s)


def dice_loss_jointv2(target, predict, *, output_key=0, target_key=0,
                      force_binary=False, threshold=0.5, _tile_sublanes=None):
    """JAX/Pallas equivalent of Dice_loss_jointv2.forward(target, predict)."""
    gt = target[target_key]
    pred = predict[output_key]
    assert gt.shape == pred.shape, f"{gt.shape} != {pred.shape}"
    B, C = pred.shape[0], pred.shape[1]

    # Flatten spatial dims (torch .view); keep native dtypes in HBM.
    pred3 = pred.reshape(B, C, -1)
    gt3 = gt.reshape(B, C, -1)
    N = pred3.shape[2]

    # Only lane-pad to a multiple of 128 (<=127 elements) so the reshape to
    # (B, C, ns, 128) is valid; partial spatial tiles are masked in-kernel.
    ns = -(-N // 128)
    n_pad = ns * 128 - N
    if n_pad:
        # Zero padding contributes 0 to both sums; with force_binary pad gt
        # with `threshold` so the strict '>' compare yields False.
        gt_pad = float(threshold) if force_binary else 0.0
        pred3 = jnp.pad(pred3, ((0, 0), (0, 0), (0, n_pad)))
        gt3 = jnp.pad(gt3, ((0, 0), (0, 0), (0, n_pad)),
                      constant_values=gt_pad)
        # TODO(synk): when N % 128 != 0 this still copies the inputs once; a
        # fully pad-free path would need lane-level masking on a 3-D block.
    pred4 = pred3.reshape(B, C, ns, 128)
    gt4 = gt3.reshape(B, C, ns, 128)

    in_itemsize = max(jnp.dtype(pred4.dtype).itemsize,
                      jnp.dtype(gt4.dtype).itemsize)
    vmem_bytes = _vmem_capacity_bytes()
    S = _tile_sublanes or _pick_tile_sublanes(C, ns, in_itemsize, vmem_bytes)
    S = max(8, (S // 8) * 8)
    num_tiles = -(-ns // S)

    # v7x has 2 TensorCores per chip sharing HBM: guarantee a >=2-wide
    # "parallel" axis when B == 1 by splitting spatial tiles into chunks.
    P = 2 if (B == 1 and num_tiles >= 2 and num_tiles % 2 == 0) else 1
    tiles_per_chunk = num_tiles // P
    has_tail = (ns % S) != 0

    kernel = functools.partial(
        _dice_partial_kernel,
        force_binary=bool(force_binary), threshold=float(threshold),
        tiles_per_chunk=tiles_per_chunk, num_tiles=num_tiles,
        ns_valid=ns, sub_s=S, has_tail=has_tail)

    out_bytes = 2 * B * P * C * 8 * 128 * 4
    cost = pl.CostEstimate(
        flops=5 * B * C * ns * 128,
        transcendentals=0,
        bytes_accessed=2 * B * C * ns * 128 * in_itemsize + out_bytes)

    footprint = S * C * 128 * (2 * 2 * in_itemsize + 6 * 4) + (8 << 20)
    vmem_limit = min(max(footprint, 32 << 20), int(0.9 * vmem_bytes))

    inter_part, union_part = pl.pallas_call(
        kernel,
        out_shape=(
            jax.ShapeDtypeStruct((B, P, C, 8, 128), jnp.float32),
            jax.ShapeDtypeStruct((B, P, C, 8, 128), jnp.float32),
        ),
        grid_spec=pltpu.PrefetchScalarGridSpec(
            num_scalar_prefetch=0,
            grid=(B, P, tiles_per_chunk),
            in_specs=[
                pl.BlockSpec((1, C, S, 128),
                             lambda b, p, t: (b, 0, p * tiles_per_chunk + t, 0)),
                pl.BlockSpec((1, C, S, 128),
                             lambda b, p, t: (b, 0, p * tiles_per_chunk + t, 0)),
            ],
            out_specs=(
                pl.BlockSpec((1, 1, C, 8, 128), lambda b, p, t: (b, p, 0, 0, 0)),
                pl.BlockSpec((1, 1, C, 8, 128), lambda b, p, t: (b, p, 0, 0, 0)),
            ),
            scratch_shapes=[
                pltpu.VMEM((C, 8, 128), jnp.float32),
                pltpu.VMEM((C, 8, 128), jnp.float32),
            ],
        ),
        compiler_params=pltpu.CompilerParams(
            dimension_semantics=("parallel", "parallel", "arbitrary"),
            vmem_limit_bytes=int(vmem_limit)),
        cost_estimate=cost,
    )(pred4, gt4)

    # Tiny epilogue: reduce the (B, P, C, 8, 128) partials + scalar math.
    intersection = jnp.sum(inter_part, axis=(0, 1, 3, 4)) + 1e-6   # (C,)
    union = jnp.sum(union_part, axis=(0, 1, 3, 4)) + 2e-6          # (C,)
    dice = 2.0 * intersection / union
    return 1.0 - jnp.mean(dice)


def _reference(target, predict, *, output_key=0, target_key=0,
               force_binary=False, threshold=0.5):
    gt = target[target_key]
    pred = predict[output_key]
    shape = gt.shape
    pred = pred.reshape(shape[0], shape[1], -1).astype(jnp.float32)
    gt = gt.reshape(shape[0], shape[1], -1).astype(jnp.float32)
    if force_binary:
        gt = (gt > threshold).astype(jnp.float32)
    intersection = jnp.sum(pred * gt, axis=(0, 2)) + 1e-6
    union = jnp.sum(pred ** 2 + gt, axis=(0, 2)) + 2e-6
    dice = 2.0 * intersection / union
    return 1.0 - jnp.mean(dice)


if __name__ == "__main__":
    key = jax.random.PRNGKey(0)

    def make(shape, k):
        k1, k2 = jax.random.split(k)
        pred = jax.nn.sigmoid(jax.random.normal(k1, shape, jnp.float32))
        gt = jax.random.uniform(k2, shape, jnp.float32)
        return {0: gt}, {0: pred}

    k1, k2, k3 = jax.random.split(key, 3)

    # 1) Baseline shapes from the module spec (B=2, C=4, 16x16 spatial),
    #    plain and force_binary paths.
    target, predict = make((2, 4, 16, 16), k1)
    for fb in (False, True):
        loss = jax.block_until_ready(
            dice_loss_jointv2(target, predict, force_binary=fb, threshold=0.5))
        ref = _reference(target, predict, force_binary=fb, threshold=0.5)
        assert jnp.allclose(loss, ref, atol=1e-5, rtol=1e-5), (fb, loss, ref)

    # 2) B=1 with a non-128-multiple spatial size: exercises the lane pad,
    #    the masked partial tail tile and the P=2 core-split path.
    target, predict = make((1, 3, 40, 40), k2)
    loss = jax.block_until_ready(
        dice_loss_jointv2(target, predict, _tile_sublanes=8))
    ref = _reference(target, predict)
    assert jnp.allclose(loss, ref, atol=1e-5, rtol=1e-5), (loss, ref)

    # 3) Multi-group sublane fold (S > 8) with no partial tail.
    target, predict = make((2, 2, 64, 64), k3)
    loss = jax.block_until_ready(
        dice_loss_jointv2(target, predict, _tile_sublanes=16))
    ref = _reference(target, predict)
    assert jnp.allclose(loss, ref, atol=1e-5, rtol=1e-5), (loss, ref)

    print("KERNEL_OK")
</pallas_src>

<mosaic_0001>
module attributes {stable_mosaic.version = 11 : i64} {
  func.func @_dice_partial_kernel(%arg0: i32, %arg1: i32, %arg2: i32, %arg3: memref<1x4x8x128xf32, #tpu.memory_space<vmem>>, %arg4: memref<1x4x8x128xf32, #tpu.memory_space<vmem>>, %arg5: memref<1x1x4x8x128xf32, #tpu.memory_space<vmem>>, %arg6: memref<1x1x4x8x128xf32, #tpu.memory_space<vmem>>, %arg7: memref<4x8x128xf32, #tpu.memory_space<vmem>>, %arg8: memref<4x8x128xf32, #tpu.memory_space<vmem>>) attributes {dimension_semantics = [#tpu.dimension_semantics<parallel>, #tpu.dimension_semantics<parallel>, #tpu.dimension_semantics<arbitrary>], iteration_bounds = array<i64: 2, 1, 1>, scalar_prefetch = 0 : i64, scratch_operands = 2 : i64, tpu.core_type = #tpu.core_type<tc>, window_params = [{transform_indices = @transform_0, window_bounds = array<i64: 1, 4, 8, 128>}, {transform_indices = @transform_1, window_bounds = array<i64: 1, 4, 8, 128>}, {transform_indices = @transform_2, window_bounds = array<i64: 1, 1, 4, 8, 128>}, {transform_indices = @transform_3, window_bounds = array<i64: 1, 1, 4, 8, 128>}]} {
    %c1_i32 = arith.constant 1 : i32
    %0 = arith.muli %arg1, %c1_i32 : i32
    %1 = arith.addi %0, %arg2 : i32
    %c0_i32 = arith.constant 0 : i32
    %2 = arith.cmpi eq, %arg2, %c0_i32 : i32
    %3 = arith.extui %2 : i1 to i32
    %c0_i32_0 = arith.constant 0 : i32
    %4 = arith.cmpi ne, %3, %c0_i32_0 : i32
    scf.if %4 {
      %cst = arith.constant 0.000000e+00 : f32
      %14 = vector.broadcast %cst : f32 to vector<4x8x128xf32>
      %c0 = arith.constant 0 : index
      %c0_6 = arith.constant 0 : index
      %c0_7 = arith.constant 0 : index
      %15 = vector.load %arg7[%c0, %c0_6, %c0_7] : memref<4x8x128xf32, #tpu.memory_space<vmem>>, vector<4x8x128xf32>
      tpu.vector_store %arg7[%c0, %c0_6, %c0_7], %14 {strides = array<i32>} : memref<4x8x128xf32, #tpu.memory_space<vmem>>, vector<4x8x128xf32>,
      %cst_8 = arith.constant 0.000000e+00 : f32
      %16 = vector.broadcast %cst_8 : f32 to vector<4x8x128xf32>
      %c0_9 = arith.constant 0 : index
      %c0_10 = arith.constant 0 : index
      %c0_11 = arith.constant 0 : index
      %17 = vector.load %arg8[%c0_9, %c0_10, %c0_11] : memref<4x8x128xf32, #tpu.memory_space<vmem>>, vector<4x8x128xf32>
      tpu.vector_store %arg8[%c0_9, %c0_10, %c0_11], %16 {strides = array<i32>} : memref<4x8x128xf32, #tpu.memory_space<vmem>>, vector<4x8x128xf32>,
    } else {
    }
    %c0_i32_1 = arith.constant 0 : i32
    %5 = arith.cmpi eq, %1, %c0_i32_1 : i32
    %true = arith.constant true
    %6 = arith.xori %5, %true : i1
    %7 = arith.extui %6 : i1 to i32
    %c0_i32_2 = arith.constant 0 : i32
    %8 = arith.cmpi ne, %7, %c0_i32_2 : i32
    scf.if %8 {
      %c0 = arith.constant 0 : index
      %c0_6 = arith.constant 0 : index
      %c0_7 = arith.constant 0 : index
      %c0_8 = arith.constant 0 : index
      %14 = vector.load %arg3[%c0, %c0_6, %c0_7, %c0_8] : memref<1x4x8x128xf32, #tpu.memory_space<vmem>>, vector<1x4x8x128xf32>
      %c0_9 = arith.constant 0 : index
      %c0_10 = arith.constant 0 : index
      %c0_11 = arith.constant 0 : index
      %c0_12 = arith.constant 0 : index
      %15 = vector.load %arg4[%c0_9, %c0_10, %c0_11, %c0_12] : memref<1x4x8x128xf32, #tpu.memory_space<vmem>>, vector<1x4x8x128xf32>
      %c0_13 = arith.constant 0 : index
      %c0_14 = arith.constant 0 : index
      %c0_15 = arith.constant 0 : index
      %16 = vector.load %arg7[%c0_13, %c0_14, %c0_15] : memref<4x8x128xf32, #tpu.memory_space<vmem>>, vector<4x8x128xf32>
      %17 = arith.mulf %14, %15 : vector<1x4x8x128xf32>
      %18 = vector.shape_cast %17 : vector<1x4x8x128xf32> to vector<4x8x128xf32>
      %19 = arith.addf %16, %18 : vector<4x8x128xf32>
      %c0_16 = arith.constant 0 : index
      %c0_17 = arith.constant 0 : index
      %c0_18 = arith.constant 0 : index
      %20 = vector.load %arg7[%c0_16, %c0_17, %c0_18] : memref<4x8x128xf32, #tpu.memory_space<vmem>>, vector<4x8x128xf32>
      tpu.vector_store %arg7[%c0_16, %c0_17, %c0_18], %19 {strides = array<i32>} : memref<4x8x128xf32, #tpu.memory_space<vmem>>, vector<4x8x128xf32>,
      %c0_19 = arith.constant 0 : index
      %c0_20 = arith.constant 0 : index
      %c0_21 = arith.constant 0 : index
      %21 = vector.load %arg8[%c0_19, %c0_20, %c0_21] : memref<4x8x128xf32, #tpu.memory_space<vmem>>, vector<4x8x128xf32>
      %22 = arith.mulf %14, %14 : vector<1x4x8x128xf32>
      %23 = arith.addf %22, %15 : vector<1x4x8x128xf32>
      %24 = vector.shape_cast %23 : vector<1x4x8x128xf32> to vector<4x8x128xf32>
      %25 = arith.addf %21, %24 : vector<4x8x128xf32>
      %c0_22 = arith.constant 0 : index
      %c0_23 = arith.constant 0 : index
      %c0_24 = arith.constant 0 : index
      %26 = vector.load %arg8[%c0_22, %c0_23, %c0_24] : memref<4x8x128xf32, #tpu.memory_space<vmem>>, vector<4x8x128xf32>
      tpu.vector_store %arg8[%c0_22, %c0_23, %c0_24], %25 {strides = array<i32>} : memref<4x8x128xf32, #tpu.memory_space<vmem>>, vector<4x8x128xf32>,
    } else {
    }
    %9 = arith.extui %5 : i1 to i32
    %c0_i32_3 = arith.constant 0 : i32
    %10 = arith.cmpi ne, %9, %c0_i32_3 : i32
    scf.if %10 {
      %c0 = arith.constant 0 : index
      %c0_6 = arith.constant 0 : index
      %c0_7 = arith.constant 0 : index
      %c0_8 = arith.constant 0 : index
      %14 = vector.load %arg3[%c0, %c0_6, %c0_7, %c0_8] : memref<1x4x8x128xf32, #tpu.memory_space<vmem>>, vector<1x4x8x128xf32>
      %c0_9 = arith.constant 0 : index
      %c0_10 = arith.constant 0 : index
      %c0_11 = arith.constant 0 : index
      %c0_12 = arith.constant 0 : index
      %15 = vector.load %arg4[%c0_9, %c0_10, %c0_11, %c0_12] : memref<1x4x8x128xf32, #tpu.memory_space<vmem>>, vector<1x4x8x128xf32>
      %16 = tpu.iota {dimensions = array<i32: 2>} : vector<1x4x8x128xi32>
      %c8_i32 = arith.constant 8 : i32
      %17 = arith.muli %1, %c8_i32 : i32
      %18 = vector.broadcast %17 : i32 to vector<1x4x8x128xi32>
      %19 = arith.addi %18, %16 : vector<1x4x8x128xi32>
      %c2_i32 = arith.constant 2 : i32
      %20 = vector.broadcast %c2_i32 : i32 to vector<1x4x8x128xi32>
      %21 = arith.cmpi slt, %19, %20 : vector<1x4x8x128xi32>
      %cst = arith.constant 0.000000e+00 : f32
      %22 = vector.broadcast %cst : f32 to vector<1x4x8x128xf32>
      %23 = arith.select %21, %14, %22 : vector<1x4x8x128xi1>, vector<1x4x8x128xf32>
      %cst_13 = arith.constant 0.000000e+00 : f32
      %24 = vector.broadcast %cst_13 : f32 to vector<1x4x8x128xf32>
      %25 = arith.select %21, %15, %24 : vector<1x4x8x128xi1>, vector<1x4x8x128xf32>
      %c0_14 = arith.constant 0 : index
      %c0_15 = arith.constant 0 : index
      %c0_16 = arith.constant 0 : index
      %26 = vector.load %arg7[%c0_14, %c0_15, %c0_16] : memref<4x8x128xf32, #tpu.memory_space<vmem>>, vector<4x8x128xf32>
      %27 = arith.mulf %23, %25 : vector<1x4x8x128xf32>
      %28 = vector.shape_cast %27 : vector<1x4x8x128xf32> to vector<4x8x128xf32>
      %29 = arith.addf %26, %28 : vector<4x8x128xf32>
      %c0_17 = arith.constant 0 : index
      %c0_18 = arith.constant 0 : index
      %c0_19 = arith.constant 0 : index
      %30 = vector.load %arg7[%c0_17, %c0_18, %c0_19] : memref<4x8x128xf32, #tpu.memory_space<vmem>>, vector<4x8x128xf32>
      tpu.vector_store %arg7[%c0_17, %c0_18, %c0_19], %29 {strides = array<i32>} : memref<4x8x128xf32, #tpu.memory_space<vmem>>, vector<4x8x128xf32>,
      %c0_20 = arith.constant 0 : index
      %c0_21 = arith.constant 0 : index
      %c0_22 = arith.constant 0 : index
      %31 = vector.load %arg8[%c0_20, %c0_21, %c0_22] : memref<4x8x128xf32, #tpu.memory_space<vmem>>, vector<4x8x128xf32>
      %32 = arith.mulf %23, %23 : vector<1x4x8x128xf32>
      %33 = arith.addf %32, %25 : vector<1x4x8x128xf32>
      %34 = vector.shape_cast %33 : vector<1x4x8x128xf32> to vector<4x8x128xf32>
      %35 = arith.addf %31, %34 : vector<4x8x128xf32>
      %c0_23 = arith.constant 0 : index
      %c0_24 = arith.constant 0 : index
      %c0_25 = arith.constant 0 : index
      %36 = vector.load %arg8[%c0_23, %c0_24, %c0_25] : memref<4x8x128xf32, #tpu.memory_space<vmem>>, vector<4x8x128xf32>
      tpu.vector_store %arg8[%c0_23, %c0_24, %c0_25], %35 {strides = array<i32>} : memref<4x8x128xf32, #tpu.memory_space<vmem>>, vector<4x8x128xf32>,
    } else {
    }
    %c0_i32_4 = arith.constant 0 : i32
    %11 = arith.cmpi eq, %arg2, %c0_i32_4 : i32
    %12 = arith.extui %11 : i1 to i32
    %c0_i32_5 = arith.constant 0 : i32
    %13 = arith.cmpi ne, %12, %c0_i32_5 : i32
    scf.if %13 {
      %c0 = arith.constant 0 : index
      %c0_6 = arith.constant 0 : index
      %c0_7 = arith.constant 0 : index
      %14 = vector.load %arg7[%c0, %c0_6, %c0_7] : memref<4x8x128xf32, #tpu.memory_space<vmem>>, vector<4x8x128xf32>
      %c0_8 = arith.constant 0 : index
      %c0_9 = arith.constant 0 : index
      %c0_10 = arith.constant 0 : index
      %c0_11 = arith.constant 0 : index
      %c0_12 = arith.constant 0 : index
      %15 = vector.load %arg5[%c0_8, %c0_9, %c0_10, %c0_11, %c0_12] : memref<1x1x4x8x128xf32, #tpu.memory_space<vmem>>, vector<1x1x4x8x128xf32>
      %16 = vector.shape_cast %15 : vector<1x1x4x8x128xf32> to vector<4x8x128xf32>
      %17 = vector.shape_cast %14 : vector<4x8x128xf32> to vector<1x1x4x8x128xf32>
      tpu.vector_store %arg5[%c0_8, %c0_9, %c0_10, %c0_11, %c0_12], %17 {strides = array<i32>} : memref<1x1x4x8x128xf32, #tpu.memory_space<vmem>>, vector<1x1x4x8x128xf32>,
      %c0_13 = arith.constant 0 : index
      %c0_14 = arith.constant 0 : index
      %c0_15 = arith.constant 0 : index
      %18 = vector.load %arg8[%c0_13, %c0_14, %c0_15] : memref<4x8x128xf32, #tpu.memory_space<vmem>>, vector<4x8x128xf32>
      %c0_16 = arith.constant 0 : index
      %c0_17 = arith.constant 0 : index
      %c0_18 = arith.constant 0 : index
      %c0_19 = arith.constant 0 : index
      %c0_20 = arith.constant 0 : index
      %19 = vector.load %arg6[%c0_16, %c0_17, %c0_18, %c0_19, %c0_20] : memref<1x1x4x8x128xf32, #tpu.memory_space<vmem>>, vector<1x1x4x8x128xf32>
      %20 = vector.shape_cast %19 : vector<1x1x4x8x128xf32> to vector<4x8x128xf32>
      %21 = vector.shape_cast %18 : vector<4x8x128xf32> to vector<1x1x4x8x128xf32>
      tpu.vector_store %arg6[%c0_16, %c0_17, %c0_18, %c0_19, %c0_20], %21 {strides = array<i32>} : memref<1x1x4x8x128xf32, #tpu.memory_space<vmem>>, vector<1x1x4x8x128xf32>,
    } else {
    }
    return
  }
  func.func @transform_0(%arg0: i32, %arg1: i32, %arg2: i32) -> (i32, i32, i32, i32) {
    %c1_i32 = arith.constant 1 : i32
    %0 = arith.muli %arg1, %c1_i32 : i32
    %1 = arith.addi %0, %arg2 : i32
    %c0_i32 = arith.constant 0 : i32
    %c0_i32_0 = arith.constant 0 : i32
    %c0_i32_1 = arith.constant 0 : i32
    return %arg0, %c0_i32, %1, %c0_i32_0 : i32, i32, i32, i32
  }
  func.func @transform_1(%arg0: i32, %arg1: i32, %arg2: i32) -> (i32, i32, i32, i32) {
    %c1_i32 = arith.constant 1 : i32
    %0 = arith.muli %arg1, %c1_i32 : i32
    %1 = arith.addi %0, %arg2 : i32
    %c0_i32 = arith.constant 0 : i32
    %c0_i32_0 = arith.constant 0 : i32
    %c0_i32_1 = arith.constant 0 : i32
    return %arg0, %c0_i32, %1, %c0_i32_0 : i32, i32, i32, i32
  }
  func.func @transform_2(%arg0: i32, %arg1: i32, %arg2: i32) -> (i32, i32, i32, i32, i32) {
    %c0_i32 = arith.constant 0 : i32
    %c0_i32_0 = arith.constant 0 : i32
    %c0_i32_1 = arith.constant 0 : i32
    %c0_i32_2 = arith.constant 0 : i32
    return %arg0, %arg1, %c0_i32, %c0_i32_0, %c0_i32_1 : i32, i32, i32, i32, i32
  }
  func.func @transform_3(%arg0: i32, %arg1: i32, %arg2: i32) -> (i32, i32, i32, i32, i32) {
    %c0_i32 = arith.constant 0 : i32
    %c0_i32_0 = arith.constant 0 : i32
    %c0_i32_1 = arith.constant 0 : i32
    %c0_i32_2 = arith.constant 0 : i32
    return %arg0, %arg1, %c0_i32, %c0_i32_0, %c0_i32_1 : i32, i32, i32, i32, i32
  }
}

</mosaic_0001>

<bundles_post_ra>
// kernel: tpu_custom_call.1
= control target key start
LH: loop header
LB: loop body
LE: loop exit
PB: predicated region body
PF: predicated region fallthrough
CT: control target
= control target key end

     0   :  { %9 = vsyncpa [#allocation5], 0  ;;  %s1157_s0 = inlined_call_operand.hbm [shape: f32[2,4,2,128], index: 0, kind: input, shape index: {}]   ;;  %s1158_s1 = inlined_call_operand.hbm [shape: f32[2,4,2,128], index: 1, kind: input, shape index: {}]   ;;  %s1159_s2 = inlined_call_operand.hbm [shape: f32[2,1,4,8,128], index: 2, kind: output, shape index: {0}]   ;;  %s1160_s3 = inlined_call_operand.hbm [shape: f32[2,1,4,8,128], index: 3, kind: output, shape index: {1}]  }
   0x1   :  { %11 = vsyncpa [#allocation5 + $0x1], 0 }
   0x2   :  { %12 = vsyncpa [#allocation8], 0 }
   0x3   :  { %14 = vsyncpa [#allocation8 + $0x1], 0 }
   0x4   :  { %15 = vsyncpa [#allocation6], 0 }
   0x5   :  { %17 = vsyncpa [#allocation6 + $0x1], 0 }
   0x6   :  { %18 = vsyncpa [#allocation11], 0 }
   0x7   :  { %20 = vsyncpa [#allocation11 + $0x1], 0  ;;  %s938_s12 = smov 0   ;;  %s940_s13 = smov 0  }
   0x8   :  { %s942_s14 = smov 0   ;;  %s944_s15 = smov 0  }
   0x9   :  { %s946_s16 = smov 0   ;;  %s948_s17 = smov 0  }
   0xa LB: > { %s679_s18 = sadd.s32 4294967295, %s902_s17   ;;  %s680_s19 = sadd.s32 4294967294, %s902_s17   ;;  %s902_s17 = sphi %s948_s17, %s26_s17   ;;  %s898_s16 = sphi %s946_s16, %s1169_s16   ;;  %s894_s15 = sphi %s944_s15, %s1168_s15   ;;  %s890_s14 = sphi %s942_s14, %s1167_s14   ;;  %s886_s13 = sphi %s940_s13, %s1166_s13   ;;  %s882_s12 = sphi %s938_s12, %s1165_s12  }
   0xb   : > { %s45_s20 = sadd.s32 1, %s898_s16  ;;  %s56_s21 = sadd.s32 1, %s890_s14 }
   0xc   : > { %p47_p0 = scmp.ge.s32.totalorder %s45_s20, 2  ;;  %p63_p1 = scmp.ne.s32.totalorder %s890_s14, %s886_s13 }
   0xd   : > { %p64_p2 = scmp.eq.s32.totalorder %s902_s17, 0  ;;  %p69_p3 = scmp.ne.s32.totalorder %s886_s13, %s882_s12 }
   0xe   : > { %s1171_s20 = smov (%p47_p0, %s45_s20), 0  ;;  %p70_p5 = scmp.eq.s32.totalorder %s679_s18, 0 }
   0xf   : > { %p979_p4 = por %p64_p2, %p63_p1  ;;  %s51_s23 = ssub.s32 %s898_s16, %s1171_s20 }
  0x10   : > { %p125_p6 = scmp.eq.s32.totalorder %s679_s18, 1  ;;  %p54_p7 = scmp.eq.s32.totalorder %s51_s23, 0 }
  0x11   : > { %p985_p8 = por %p70_p5, %p69_p3  ;;  %p131_p10 = scmp.eq.s32.totalorder %s680_s19, 1 }
  0x12   : > { %p989_p9 = por %p125_p6, %p63_p1  ;;  %p682_p12 = scmp.ge.s32.totalorder %s902_s17, 2 }
  0x13   : > { %s994_s26 = scalar_select %p54_p7, %s890_s14, %s56_s21  }
  0x14   : > { %p996_p11 = por %p131_p10, %p69_p3  ;;  %175 = sbr.rel (%p682_p12) target bundleno = 67 (0x43), region = 16 }
  0x1b   : > { %178 = sbr.rel (!%p979_p4) target bundleno = 47 (0x2f), region = 20 }
  0x22   : > { %s179_s28 = sand.u32 1, %s890_s14  }
  0x23   : > { %s683_s29 = sshll.u32 %s179_s28, 5  ;;  %s180_s30 = scalar_lea.sflag [#allocation5], %s179_s28 }
  0x24   : > { %s183_s4 = scalar_lea.vmem [#allocation4], %s683_s29 }
  0x25   : > { %190 = vsyncadd %s180_s30, 384  ;;  %s706_s5 = sshll.u32 %s898_s16, 7  ;;  %s202_s6 = sld [smem:[#allocation0]]  }
  0x26   : > { %s195_s9 = scalar_lea.hbm %s1157_s0, %s706_s5  ;;  %s210_s10 = sshll.u32 %s183_s4, 4  ;;  %s211_s10 = int_to_ptr.vmem [resolvable:$true] %s210_s10 }
  0x27   : > { %s904_s11 = smov 32   ;;  %s905_s18 = smov 128  }
  0x28   : > { %217 = sst [smem:[#allocation13]] %s904_s11  ;;  %s906_s19 = smov 1  }
  0x29   : > { %219 = sst [smem:[#allocation13 + $0x1]] %s905_s18  ;;  %s907_s28 = smov 2  }
  0x2a   : > { %221 = sst [smem:[#allocation13 + $0x2]] %s906_s19  ;;  %s908_s29 = smov [#allocation12]  }
  0x2b   : > { %s686_s21 = sshll.u32 %s202_s6, 26  ;;  %223 = sst [smem:[#allocation13 + $0x3]] %s904_s11 }
  0x2c   : > { %s687_s23 = sadd.s32 134217728, %s686_s21  ;;  %225 = sst [smem:[#allocation13 + $0x4]] %s904_s11 }
  0x2d   : > { %227 = sst [smem:[#allocation13 + $0x5]] %s907_s28 }
  0x2e   : > { %229 = dma.general %s195_s9, 128, %s211_s10, %s180_s30, %s908_s29, [#allocation13], %s687_s23, 0  }
  0x2f PF: > { %232 = sbr.rel (!%p979_p4) target bundleno = 67 (0x43), region = 24 }
  0x36   : > { %s233_s4 = sand.u32 1, %s890_s14  }
  0x37   : > { %s688_s5 = sshll.u32 %s233_s4, 5  ;;  %s234_s7 = scalar_lea.sflag [#allocation8], %s233_s4 }
  0x38   : > { %s237_s8 = scalar_lea.vmem [#allocation7], %s688_s5 }
  0x39   : > { %244 = vsyncadd %s234_s7, 384  ;;  %s707_s18 = sshll.u32 %s898_s16, 7  ;;  %s256_s6 = sld [smem:[#allocation0]]  }
  0x3a   : > { %s249_s11 = scalar_lea.hbm %s1158_s1, %s707_s18  ;;  %s264_s28 = sshll.u32 %s237_s8, 4  ;;  %s265_s28 = int_to_ptr.vmem [resolvable:$true] %s264_s28 }
  0x3b   : > { %s909_s30 = smov 32   ;;  %s910_s9 = smov 128  }
  0x3c   : > { %271 = sst [smem:[#allocation15]] %s909_s30  ;;  %s911_s22 = smov 1  }
  0x3d   : > { %273 = sst [smem:[#allocation15 + $0x1]] %s910_s9  ;;  %s912_s29 = smov 2  }
  0x3e   : > { %275 = sst [smem:[#allocation15 + $0x2]] %s911_s22  ;;  %s913_s4 = smov [#allocation14]  }
  0x3f   : > { %s691_s10 = sshll.u32 %s256_s6, 26  ;;  %277 = sst [smem:[#allocation15 + $0x3]] %s909_s30 }
  0x40   : > { %s692_s23 = sadd.s32 134217728, %s691_s10  ;;  %279 = sst [smem:[#allocation15 + $0x4]] %s909_s30 }
  0x41   : > { %281 = sst [smem:[#allocation15 + $0x5]] %s912_s29 }
  0x42   : > { %283 = dma.general %s249_s11, 128, %s265_s28, %s234_s7, %s913_s4, [#allocation15], %s692_s23, 0  }
  0x43 PF: > { %p693_p13 = scmp.ge.s32.totalorder %s902_s17, 1  ;;  %p285_p0 = scmp.lt.s32.totalorder %s902_s17, 3 }
  0x45   : > { %p286_p1 = pnand %p693_p13, %p285_p0 }
  0x46   : > { %s1020_s5 = sand.u32 (!%p286_p1), 1, %s886_s13  }
  0x47   : > { %289 = sbr.rel (%p286_p1) target bundleno = 131 (0x83), region = 28  ;;  %s1023_s8 = sshll.u32 (!%p286_p1), %s1020_s5, 5 }
  0x48   : > { %s292_s18 = scalar_lea.sflag (!%p286_p1), [#allocation5], %s1020_s5  ;;  %s295_s6 = scalar_lea.vmem (!%p286_p1), [#allocation4], %s1023_s8 }
  0x4e   : > { %865 = dma.done.wait (%p985_p8), %s292_s18, 512  }
  0x4f   : > { %867 = vsyncadd (%p985_p8), %s292_s18, 4294966784  ;;  %s301_s7 = scalar_lea.sflag [#allocation8], %s1020_s5  ;;  %s304_s19 = scalar_lea.vmem [#allocation7], %s1023_s8 }
  0x50   : > { %869 = dma.done.wait (%p985_p8), %s301_s7, 512  }
  0x51   : > { %871 = vsyncadd (%p985_p8), %s301_s7, 4294966784  ;;  %v418_v0 = vlaneseq  ;;  %s1038_s21 = scalar_lea.vmem [#allocation9], %s1023_s8  ;;  %v410_v2 = vld [vmem:[%s295_s6] sm:$0xff]  ;;  %v411_v4 = vld [vmem:[%s295_s6 + $0x8] sm:$0xff]  ;;  %s708_s28 = sshll.u32 %s894_s15, 9 }
  0x52   : > { %s508_s11 = sshll.u32 %s1038_s21, 4  ;;  %v414_v3 = vld [vmem:[%s304_s19] sm:$0xff]  ;;  %v415_v7 = vld [vmem:[%s304_s19 + $0x8] sm:$0xff]  ;;  %v412_v9 = vld [vmem:[%s295_s6 + $0x10] sm:$0xff]  ;;  %s1051_s24 = scalar_lea.vmem [#allocation10], %s1023_s8  ;;  %s1045_s11 = int_to_ptr.vmem [resolvable:$true] %s508_s11 }
  0x53   : > { %v419_v1 = vshrl.u32 %v418_v0, 7  ;;  %v416_v10 = vld [vmem:[%s304_s19 + $0x10] sm:$0xff]  ;;  %v413_v15 = vld [vmem:[%s295_s6 + $0x18] sm:$0xff]  ;;  %s526_s30 = sshll.u32 %s1051_s24, 4  ;;  %s1061_s10 = scalar_lea.hbm %s1159_s2, %s708_s28  ;;  %s1066_s30 = int_to_ptr.vmem [resolvable:$true] %s526_s30 }
  0x54   : > { %v417_v16 = vld [vmem:[%s304_s19 + $0x18] sm:$0xff]  ;;  %s1074_s4 = scalar_lea.hbm %s1160_s3, %s708_s28  ;;  %s488_s8 = scalar_lea.sflag [#allocation6], %s1020_s5 }
  0x55   : > { %vm423_vm0 = vcmp.lt.s32.totalorder %v419_v1, 2  ;;  %s784_s18 = scalar_lea.vmem %s1045_s11, 512  ;;  %s914_s6 = smov [#allocation9]  }
  0x56   : > { %v424_v5 = vsel %vm423_vm0, %v410_v2, 0.0  ;;  %v428_v6 = vsel %vm423_vm0, %v414_v3, 0.0  ;;  %v425_v8 = vsel %vm423_vm0, %v411_v4, 0.0  ;;  %v429_v12 = vsel %vm423_vm0, %v415_v7, 0.0  ;;  %p785_p2 = scmp.ne.s32.totalorder %s1045_s11, %s784_s18  ;;  %s788_s7 = sshll.u32 %s914_s6, 4  ;;  %s789_s7 = int_to_ptr.vmem [resolvable:$false] %s788_s7 }
  0x57   : > { %v436_v11 = vmul.f32 %v428_v6, %v424_v5  ;;  %v426_v13 = vsel %vm423_vm0, %v412_v9, 0.0  ;;  %v430_v14 = vsel %vm423_vm0, %v416_v10, 0.0  ;;  %v437_v17 = vmul.f32 %v429_v12, %v425_v8  ;;  %s790_s19 = scalar_lea.vmem %s789_s7, 1024  ;;  %p791_p5 = scmp.lt.s32.totalorder %s1045_s11, %s789_s7 }
  0x58   : > { %v438_v18 = vmul.f32 %v430_v14, %v426_v13  ;;  %v427_v19 = vsel %vm423_vm0, %v413_v15, 0.0  ;;  %v431_v20 = vsel %vm423_vm0, %v417_v16, 0.0  ;;  %v452_v22 = vmul.f32 %v424_v5, %v424_v5  ;;  %p786_p3 = pnand %p785_p2, %p989_p9  ;;  %p792_p6 = scmp.lt.s32.totalorder %s790_s19, %s784_s18 }
  0x59   : > { %475 = vst [vmem:[%s1038_s21] sm:$0xff] %v436_v11  ;;  %v439_v21 = vmul.f32 %v431_v20, %v427_v19  ;;  %v453_v23 = vmul.f32 %v425_v8, %v425_v8  ;;  %v454_v24 = vmul.f32 %v426_v13, %v426_v13  ;;  %476 = vst [vmem:[%s1038_s21 + $0x8] sm:$0xff] %v437_v17 }
  0x5a   : > { %477 = vst [vmem:[%s1038_s21 + $0x10] sm:$0xff] %v438_v18  ;;  %v455_v25 = vmul.f32 %v427_v19, %v427_v19  ;;  %v456_v26 = vadd.f32 %v452_v22, %v428_v6  ;;  %p787_p4 = pneg %p786_p3  ;;  %p793_p7 = por %p792_p6, %p791_p5 }
  0x5b   : > { %478 = vst [vmem:[%s1038_s21 + $0x18] sm:$0xff] %v439_v21  ;;  %v457_v27 = vadd.f32 %v453_v23, %v429_v12  ;;  %v458_v28 = vadd.f32 %v454_v24, %v430_v14 }
  0x5c   : > { %v459_v29 = vadd.f32 %v455_v25, %v431_v20  ;;  %p794_p8 = pnand %p793_p7, %p787_p4 }
  0x5e   : > { %797 = shalt.err (!%p794_p8)
}
  0x5f   : > { %s798_s15 = scalar_lea.hbm %s1061_s10, 512  ;;  %s802_s9 = scalar_lea.hbm %s1159_s2, 1024 }
  0x60   : > { %p799_p10 = scmp.ne.s32.totalorder %s1061_s10, %s798_s15  ;;  %p803_p1 = scmp.lt.u32.totalorder %s1061_s10, %s1159_s2 }
  0x61   : > { %p804_p2 = scmp.lt.u32.totalorder %s802_s9, %s798_s15  ;;  %p806_p4 = scmp.lt.u32.totalorder %s798_s15, %s1061_s10 }
  0x62   : > { %p800_p13 = pnand %p799_p10, %p989_p9 }
  0x63   : > { %p805_p3 = por %p804_p2, %p803_p1 }
  0x64   : > { %p801_p0 = pneg %p800_p13 }
  0x65   : > { %p807_p5 = por %p806_p4, %p805_p3 }
  0x67   : > { %p808_p6 = pnand %p807_p5, %p801_p0 }
  0x69   : > { %811 = shalt.err (!%p808_p6)
}
  0x6a   : > { %s915_s29 = smov 128   ;;  %s916_s18 = smov 8   ;;  %483 = vst [vmem:[%s1051_s24] sm:$0xff] %v456_v26  ;;  %484 = vst [vmem:[%s1051_s24 + $0x8] sm:$0xff] %v457_v27 }
  0x6b   : > { %712 = dma.vmem_to_hbm [thread:$0]  (%p989_p9), %s1045_s11, 512, %s1061_s10, %s488_s8, %s915_s29, %s915_s29, %s916_s18  }
  0x6c   : > { %485 = vst [vmem:[%s1051_s24 + $0x10] sm:$0xff] %v458_v28  ;;  %486 = vst [vmem:[%s1051_s24 + $0x18] sm:$0xff] %v459_v29  ;;  %s493_s6 = scalar_lea.sflag [#allocation11], %s1020_s5  ;;  %s812_s7 = scalar_lea.vmem %s1066_s30, 512 }
  0x6d   : > { %p813_p7 = scmp.ne.s32.totalorder %s1066_s30, %s812_s7  ;;  %s917_s19 = smov [#allocation10]  }
  0x6e   : > { %s816_s15 = sshll.u32 %s917_s19, 4  ;;  %s817_s15 = int_to_ptr.vmem [resolvable:$false] %s816_s15 }
  0x6f   : > { %p814_p8 = pnand %p813_p7, %p989_p9  ;;  %s818_s21 = scalar_lea.vmem %s817_s15, 1024 }
  0x70   : > { %p819_p13 = scmp.lt.s32.totalorder %s1066_s30, %s817_s15  ;;  %p820_p0 = scmp.lt.s32.totalorder %s818_s21, %s812_s7 }
  0x71   : > { %p815_p10 = pneg %p814_p8 }
  0x72   : > { %p821_p1 = por %p820_p0, %p819_p13 }
  0x74   : > { %p822_p2 = pnand %p821_p1, %p815_p10 }
  0x76   : > { %825 = shalt.err (!%p822_p2)
}
  0x77   : > { %s826_s11 = scalar_lea.hbm %s1074_s4, 512  ;;  %s830_s8 = scalar_lea.hbm %s1160_s3, 1024 }
  0x78   : > { %p827_p3 = scmp.ne.s32.totalorder %s1074_s4, %s826_s11  ;;  %p831_p6 = scmp.lt.u32.totalorder %s1074_s4, %s1160_s3 }
  0x79   : > { %p832_p7 = scmp.lt.u32.totalorder %s830_s8, %s826_s11  ;;  %p834_p10 = scmp.lt.u32.totalorder %s826_s11, %s1074_s4 }
  0x7a   : > { %p828_p4 = pnand %p827_p3, %p989_p9 }
  0x7b   : > { %p833_p8 = por %p832_p7, %p831_p6 }
  0x7c   : > { %p829_p5 = pneg %p828_p4 }
  0x7d   : > { %p835_p13 = por %p834_p10, %p833_p8 }
  0x7f   : > { %p836_p0 = pnand %p835_p13, %p829_p5 }
  0x81   : > { %839 = shalt.err (!%p836_p0)
}
  0x82   : > { %713 = dma.vmem_to_hbm [thread:$0]  (%p989_p9), %s1066_s30, 512, %s1074_s4, %s493_s6, %s915_s29, %s915_s29, %s916_s18  }
  0x83 PF: > { %s541_s22 = sand.u32 1, %s882_s12   ;;  %p717_p1 = pnand %p682_p12, %p996_p11 }
  0x84   : > { %s542_s23 = scalar_lea.sflag [#allocation6], %s541_s22 }
  0x85   : > { %873 = dma.done.wait (!%p717_p1), %s542_s23, 512  }
  0x86   : > { %875 = vsyncadd (!%p717_p1), %s542_s23, 4294966784  ;;  %s551_s25 = scalar_lea.sflag [#allocation11], %s541_s22 }
  0x87   : > { %877 = dma.done.wait (!%p717_p1), %s551_s25, 512  }
  0x88   : > { %879 = vsyncadd (!%p717_p1), %s551_s25, 4294966784  ;;  %s26_s17 = sadd.s32 1, %s902_s17   ;;  %s1165_s12 = smov %s886_s13 }
  0x89   : > { %p23_p2 = scmp.ge.s32.totalorder %s26_s17, 4   ;;  %s1166_s13 = smov %s890_s14 }
  0x8a   : > { %s1167_s14 = smov %s994_s26  ;;  %s1168_s15 = smov %s898_s16 }
  0x8b   : > { %s1169_s16 = smov %s1171_s20  ;;  %25 = sbr.rel (!%p23_p2) target bundleno = 10 (0xa), region = 129 }
  0x92   :  { %556 = vsyncpa [#allocation5], 1 }
  0x93   :  { %558 = vsyncpa [#allocation5 + $0x1], 1 }
  0x94   :  { %559 = vsyncpa [#allocation8], 1 }
  0x95   :  { %561 = vsyncpa [#allocation8 + $0x1], 1 }
  0x96   :  { %562 = vsyncpa [#allocation6], 1 }
  0x97   :  { %564 = vsyncpa [#allocation6 + $0x1], 1 }
  0x98   :  { %565 = vsyncpa [#allocation11], 1 }
  0x99   :  { %567 = vsyncpa [#allocation11 + $0x1], 1 }

</bundles_post_ra>
